<compile_context>
chip_gen: v5e
topology: v5e:2x2
jax: 0.10.0
libtpu: 0.0.40
codegen_flags: <defaults>
</compile_context>

<pallas_src>
import jax
import jax.numpy as jnp
from jax.experimental import pallas as pl
from jax.experimental.pallas import tpu as pltpu


def _attention_kernel(x1_ref, x2_ref, wt_ref, b_ref, o_ref):
    # x1_ref: (Bt, C1, HW) f32    x2_ref: (Bt, C2) f32
    # wt_ref: (C2, C1)  f32       b_ref : (1, C1) f32
    # o_ref : (Bt, C1)  f32
    x1 = x1_ref[...]
    x2 = x2_ref[...]
    wt = wt_ref[...]
    b = b_ref[...]

    # Linear: x2r[n, c1] = sum_c2 x2[n, c2] * W[c1, c2] + bias[c1]
    # Pure-VPU form (shapes are far too small to feed the MXU usefully).
    x2r = jnp.sum(x2[:, :, None] * wt[None, :, :], axis=1) + b      # (Bt, C1)

    # Compatibility scores: VPU broadcast-multiply + XLU sublane reduce.
    scores = jnp.sum(x1 * x2r[:, :, None], axis=1)                  # (Bt, HW)

    # Numerically-stable softmax over the spatial axis.
    m = jnp.max(scores, axis=-1, keepdims=True)
    e = jnp.exp(scores - m)
    denom = jnp.sum(e, axis=-1, keepdims=True)
    attn = e * pl.reciprocal(denom, approx=True)                    # (Bt, HW)

    # Weighted spatial sum: VPU multiply + XLU lane reduce.
    o_ref[...] = jnp.sum(x1 * attn[:, None, :], axis=-1)            # (Bt, C1)


def _pick_batch_tile(B, C1, HW, budget_bytes=8 * 1024 * 1024):
    """Largest batch tile whose double-buffered x1 block stays under `budget_bytes`.

    Budget is conservative (8 MiB) so it is safe under v7x's 32 MiB scoped VMEM
    default as well as v5e/v6e. Tiles smaller than the full batch must be a
    multiple of 8 (f32 sublane constraint on the (Bt, C2)/(Bt, C1) blocks).
    """
    per_batch_bytes = C1 * HW * 4                     # one batch row of x1, f32
    if 2 * B * per_batch_bytes <= budget_bytes:
        return B
    bt = (budget_bytes // (2 * per_batch_bytes)) // 8 * 8
    bt = max(int(bt), 8)
    while bt > 8 and B % bt != 0:
        bt -= 8
    if B % bt != 0:
        return B                                      # no clean divisor: single block
    return bt


def attention_layer(input1, input2, weight, bias, *, block_b=None):
    """input1: (B, C1, H, W), input2: (B, C2), weight: (C1, C2), bias: (C1,)"""
    B, C1, H, W = input1.shape
    C2 = input2.shape[1]
    HW = H * W

    x1_flat = input1.reshape(B, C1, HW).astype(jnp.float32)
    x2 = input2.astype(jnp.float32)
    wt = weight.astype(jnp.float32).T                 # (C2, C1): no in-kernel transpose
    b2d = bias.reshape(1, C1).astype(jnp.float32)

    bt = _pick_batch_tile(B, C1, HW) if block_b is None else block_b
    assert B % bt == 0 and (bt == B or bt % 8 == 0), (B, bt)
    grid = (B // bt,)

    cost = pl.CostEstimate(
        flops=4 * B * C1 * HW + 2 * B * C2 * C1,      # two multiply-reduce passes + Linear
        transcendentals=B * HW,                       # exp in the softmax
        bytes_accessed=4 * (B * C1 * HW + B * C2 + C2 * C1 + C1 + B * C1),
    )

    return pl.pallas_call(
        _attention_kernel,
        out_shape=jax.ShapeDtypeStruct((B, C1), jnp.float32),
        grid=grid,
        in_specs=[
            pl.BlockSpec((bt, C1, HW), lambda i: (i, 0, 0)),   # x1 tile per batch block
            pl.BlockSpec((bt, C2), lambda i: (i, 0)),          # x2 tile per batch block
            pl.BlockSpec((C2, C1), lambda i: (0, 0)),          # weight (resident)
            pl.BlockSpec((1, C1), lambda i: (0, 0)),           # bias (resident)
        ],
        out_specs=pl.BlockSpec((bt, C1), lambda i: (i, 0)),
        compiler_params=pltpu.CompilerParams(
            dimension_semantics=("parallel",),        # megacore-shardable batch axis
        ),
        cost_estimate=cost,
    )(x1_flat, x2, wt, b2d)


def _reference(input1, input2, weight, bias):
    B, C1, H, W = input1.shape
    x1 = input1.reshape(B, C1, H * W)
    x2r = input2 @ weight.T + bias                    # (B, C1)
    scores = jnp.einsum('bc,bcs->bs', x2r, x1)        # (B, HW)
    attn = jax.nn.softmax(scores, axis=-1)
    return jnp.einsum('bcs,bs->bc', x1, attn)         # (B, C1)


if __name__ == "__main__":
    # Small shapes consistent with the module's forward; B=16 with block_b=8
    # exercises a 2-step pipelined grid.
    B, C1, H, W = 16, 4, 16, 16   # input1 side (feature map)
    C2 = 8                        # input2 side (vector)

    key = jax.random.PRNGKey(0)
    k1, k2, kw, kb = jax.random.split(key, 4)

    input1 = jax.random.normal(k1, (B, C1, H, W), dtype=jnp.float32)
    input2 = jax.random.normal(k2, (B, C2), dtype=jnp.float32)

    # Deterministic nn.Linear(C2, C1)-style init: U(-1/sqrt(C2), 1/sqrt(C2)).
    bound = 1.0 / jnp.sqrt(jnp.float32(C2))
    weight = jax.random.uniform(kw, (C1, C2), jnp.float32, -bound, bound)
    bias = jax.random.uniform(kb, (C1,), jnp.float32, -bound, bound)

    out = attention_layer(input1, input2, weight, bias, block_b=8)
    out = jax.block_until_ready(out)

    ref = _reference(input1, input2, weight, bias)
    assert out.shape == (B, C1)
    # Tolerance slightly loosened for the approx (EUP) reciprocal in the softmax.
    assert jnp.allclose(out, ref, atol=5e-3, rtol=5e-3), float(jnp.max(jnp.abs(out - ref)))

    print("KERNEL_OK")
</pallas_src>

<mosaic_0001>
module attributes {stable_mosaic.version = 11 : i64} {
  func.func @_attention_kernel(%arg0: i32, %arg1: memref<8x4x256xf32, #tpu.memory_space<vmem>>, %arg2: memref<8x8xf32, #tpu.memory_space<vmem>>, %arg3: memref<8x4xf32, #tpu.memory_space<vmem>>, %arg4: memref<1x4xf32, #tpu.memory_space<vmem>>, %arg5: memref<8x4xf32, #tpu.memory_space<vmem>>) attributes {dimension_semantics = [#tpu.dimension_semantics<parallel>], iteration_bounds = array<i64: 2>, scalar_prefetch = 0 : i64, scratch_operands = 0 : i64, tpu.core_type = #tpu.core_type<tc>, window_params = [{transform_indices = @transform_0, window_bounds = array<i64: 8, 4, 256>}, {transform_indices = @transform_1, window_bounds = array<i64: 8, 8>}, {pipeline_mode = #tpu.pipeline_mode<synchronous>, transform_indices = @transform_2, window_bounds = array<i64: 8, 4>}, {pipeline_mode = #tpu.pipeline_mode<synchronous>, transform_indices = @transform_3, window_bounds = array<i64: 1, 4>}, {transform_indices = @transform_4, window_bounds = array<i64: 8, 4>}]} {
    %c0 = arith.constant 0 : index
    %c0_0 = arith.constant 0 : index
    %c0_1 = arith.constant 0 : index
    %0 = vector.load %arg1[%c0, %c0_0, %c0_1] : memref<8x4x256xf32, #tpu.memory_space<vmem>>, vector<8x4x256xf32>
    %c0_2 = arith.constant 0 : index
    %c0_3 = arith.constant 0 : index
    %1 = vector.load %arg2[%c0_2, %c0_3] : memref<8x8xf32, #tpu.memory_space<vmem>>, vector<8x8xf32>
    %c0_4 = arith.constant 0 : index
    %c0_5 = arith.constant 0 : index
    %2 = vector.load %arg3[%c0_4, %c0_5] : memref<8x4xf32, #tpu.memory_space<vmem>>, vector<8x4xf32>
    %c0_6 = arith.constant 0 : index
    %c0_7 = arith.constant 0 : index
    %3 = vector.load %arg4[%c0_6, %c0_7] : memref<1x4xf32, #tpu.memory_space<vmem>>, vector<1x4xf32>
    %4 = vector.shape_cast %1 : vector<8x8xf32> to vector<8x8x1xf32>
    %5 = vector.shape_cast %2 : vector<8x4xf32> to vector<1x8x4xf32>
    %6 = vector.broadcast %4 : vector<8x8x1xf32> to vector<8x8x4xf32>
    %7 = vector.broadcast %5 : vector<1x8x4xf32> to vector<8x8x4xf32>
    %8 = arith.mulf %6, %7 : vector<8x8x4xf32>
    %cst = arith.constant dense<0.000000e+00> : vector<8x4xf32>
    %9 = vector.multi_reduction <add>, %8, %cst [1] : vector<8x8x4xf32> to vector<8x4xf32>
    %10 = vector.broadcast %3 : vector<1x4xf32> to vector<8x4xf32>
    %11 = arith.addf %9, %10 : vector<8x4xf32>
    %12 = vector.shape_cast %11 : vector<8x4xf32> to vector<8x4x1xf32>
    %13 = vector.broadcast %12 : vector<8x4x1xf32> to vector<8x4x256xf32>
    %14 = arith.mulf %0, %13 : vector<8x4x256xf32>
    %cst_8 = arith.constant dense<0.000000e+00> : vector<8x256xf32>
    %15 = vector.multi_reduction <add>, %14, %cst_8 [1] : vector<8x4x256xf32> to vector<8x256xf32>
    %cst_9 = arith.constant dense<0xFF800000> : vector<8xf32>
    %16 = vector.multi_reduction <maximumf>, %15, %cst_9 [1] : vector<8x256xf32> to vector<8xf32>
    %17 = vector.shape_cast %16 : vector<8xf32> to vector<8x1xf32>
    %18 = vector.broadcast %17 : vector<8x1xf32> to vector<8x256xf32>
    %19 = arith.subf %15, %18 : vector<8x256xf32>
    %20 = math.exp %19 : vector<8x256xf32>
    %cst_10 = arith.constant dense<0.000000e+00> : vector<8xf32>
    %21 = vector.multi_reduction <add>, %20, %cst_10 [1] : vector<8x256xf32> to vector<8xf32>
    %22 = vector.shape_cast %21 : vector<8xf32> to vector<8x1xf32>
    %23 = tpu.reciprocal %22 {approx = true} : vector<8x1xf32> -> vector<8x1xf32>
    %24 = vector.broadcast %23 : vector<8x1xf32> to vector<8x256xf32>
    %25 = arith.mulf %20, %24 : vector<8x256xf32>
    %26 = vector.shape_cast %25 : vector<8x256xf32> to vector<8x1x256xf32>
    %27 = vector.broadcast %26 : vector<8x1x256xf32> to vector<8x4x256xf32>
    %28 = arith.mulf %0, %27 : vector<8x4x256xf32>
    %cst_11 = arith.constant dense<0.000000e+00> : vector<8x4xf32>
    %29 = vector.multi_reduction <add>, %28, %cst_11 [2] : vector<8x4x256xf32> to vector<8x4xf32>
    %c0_12 = arith.constant 0 : index
    %c0_13 = arith.constant 0 : index
    %30 = vector.load %arg5[%c0_12, %c0_13] : memref<8x4xf32, #tpu.memory_space<vmem>>, vector<8x4xf32>
    tpu.vector_store %arg5[%c0_12, %c0_13], %29 {strides = array<i32>} : memref<8x4xf32, #tpu.memory_space<vmem>>, vector<8x4xf32>,
    return
  }
  func.func @transform_0(%arg0: i32) -> (i32, i32, i32) {
    %c0_i32 = arith.constant 0 : i32
    %c0_i32_0 = arith.constant 0 : i32
    %c0_i32_1 = arith.constant 0 : i32
    return %arg0, %c0_i32, %c0_i32_0 : i32, i32, i32
  }
  func.func @transform_1(%arg0: i32) -> (i32, i32) {
    %c0_i32 = arith.constant 0 : i32
    %c0_i32_0 = arith.constant 0 : i32
    return %arg0, %c0_i32 : i32, i32
  }
  func.func @transform_2(%arg0: i32) -> (i32, i32) {
    %c0_i32 = arith.constant 0 : i32
    %c0_i32_0 = arith.constant 0 : i32
    %c0_i32_1 = arith.constant 0 : i32
    return %c0_i32, %c0_i32_0 : i32, i32
  }
  func.func @transform_3(%arg0: i32) -> (i32, i32) {
    %c0_i32 = arith.constant 0 : i32
    %c0_i32_0 = arith.constant 0 : i32
    %c0_i32_1 = arith.constant 0 : i32
    return %c0_i32, %c0_i32_0 : i32, i32
  }
  func.func @transform_4(%arg0: i32) -> (i32, i32) {
    %c0_i32 = arith.constant 0 : i32
    %c0_i32_0 = arith.constant 0 : i32
    return %arg0, %c0_i32 : i32, i32
  }
}

</mosaic_0001>

<bundles_post_ra>
// kernel: tpu_custom_call.1
= control target key start
LH: loop header
LB: loop body
LE: loop exit
PB: predicated region body
PF: predicated region fallthrough
CT: control target
= control target key end

     0   :  { %9 = vsyncpa [#allocation3], 0  ;;  %s1605_s0 = inlined_call_operand.hbm [shape: f32[16,4,256], index: 0, kind: input, shape index: {}]   ;;  %s1606_s1 = inlined_call_operand.vmem [shape: f32[16,8], index: 1, kind: input, shape index: {}]   ;;  %s1607_s2 = inlined_call_operand.vmem [shape: f32[8,4], index: 2, kind: input, shape index: {}]   ;;  %s1608_s3 = inlined_call_operand.vmem [shape: f32[1,4], index: 3, kind: input, shape index: {}]   ;;  %s1609_s4 = inlined_call_operand.vmem [shape: f32[16,4], index: 4, kind: output, shape index: {}]  }
   0x1   :  { %11 = vsyncpa [#allocation3 + $0x1], 0  ;;  %s1292_s15 = smov 0   ;;  %s1294_s16 = smov 0  }
   0x2   :  { %s1296_s17 = smov 0   ;;  %s1298_s18 = smov 0  }
   0x3 LB: > { %s1311_s19 = sadd.s32 4294967295, %s1262_s18   ;;  %s1314_s20 = sadd.s32 1, %s1262_s18   ;;  %s1262_s18 = sphi %s1298_s18, %s1616_s18   ;;  %s1258_s17 = sphi %s1296_s17, %s1615_s17   ;;  %s1254_s16 = sphi %s1294_s16, %s1614_s16   ;;  %s1250_s15 = sphi %s1292_s15, %s1613_s15  }
   0x4   : > { %s21_s21 = ssub.s32 %s1262_s18, %s1314_s20  ;;  %s24_s22 = sadd.s32 1, %s1258_s17 }
   0x5   : > { %p22_p0 = scmp.eq.s32.totalorder %s21_s21, 0  ;;  %p31_p1 = scmp.ne.s32.totalorder %s1258_s17, %s1254_s16 }
   0x6   : > { %p32_p2 = scmp.eq.s32.totalorder %s1262_s18, 0  ;;  %p37_p3 = scmp.ne.s32.totalorder %s1254_s16, %s1250_s15 }
   0x7   : > { %s1324_s23 = scalar_select %p22_p0, %s1258_s17, %s24_s22  }
   0x8   : > { %p1326_p4 = por %p32_p2, %p31_p1  ;;  %p38_p5 = scmp.eq.s32.totalorder %s1311_s19, 0 }
   0x9   : > { %p1124_p6 = scmp.lt.s32.totalorder %s1262_s18, 2  ;;  %s161_s26 = sand.u32 1, %s1258_s17  }
   0xa   : > { %p1332_p7 = por %p38_p5, %p37_p3  ;;  %s1106_s27 = sshll.u32 %s161_s26, 6 }
   0xb   : > { %s1117_s28 = sshll.u32 %s1262_s18, 6  ;;  %s165_s6 = scalar_lea.vmem [#allocation2], %s1106_s27 }
   0xc   : > { %s171_s5 = scalar_lea.hbm %s1605_s0, %s1117_s28  ;;  %s174_s7 = sshll.u32 %s165_s6, 4  ;;  %s175_s7 = int_to_ptr.vmem [resolvable:$true] %s174_s7 }
   0xd   : > { %s172_s8 = sshll.u32 %s171_s5, 4  ;;  %p1343_p8 = pnand %p1124_p6, %p1326_p4  ;;  %s173_s8 = int_to_ptr.hbm [resolvable:$true] %s172_s8 }
   0xe   : > { %p1110_p9 = scmp.ge.s32.totalorder %s1262_s18, 1  ;;  %s162_s10 = scalar_lea.sflag [#allocation3], %s161_s26 }
   0xf   : > { %s1198_s11 = sshra.s32 %s173_s8, 4  ;;  %p1202_p11 = pneg %p1343_p8  ;;  %s1199_s11 = int_to_ptr.hbm [resolvable:$true] %s1198_s11 }
  0x10   : > { %s1200_s12 = scalar_lea.hbm %s1199_s11, 64  ;;  %s1205_s15 = scalar_lea.hbm %s1605_s0, 128 }
  0x11   : > { %p1201_p10 = scmp.ne.s32.totalorder %s1199_s11, %s1200_s12  ;;  %p1206_p0 = scmp.lt.s32.totalorder %s1199_s11, %s1605_s0 }
  0x12   : > { %p1207_p1 = scmp.lt.s32.totalorder %s1205_s15, %s1200_s12 }
  0x13   : > { %p1203_p12 = pnand %p1202_p11, %p1201_p10 }
  0x14   : > { %p1208_p2 = por %p1207_p1, %p1206_p0 }
  0x15   : > { %p1204_p13 = pneg %p1203_p12 }
  0x17   : > { %p1209_p3 = pnand %p1208_p2, %p1204_p13 }
  0x19   : > { %1212 = shalt.err (!%p1209_p3)
}
  0x1a   : > { %s1264_s24 = smov 128   ;;  %s1265_s26 = smov 8  }
  0x1b   : > { %1123 = dma.hbm_to_vmem [thread:$0]  (!%p1343_p8), %s173_s8, 1024, %s175_s7, %s162_s10, %s1264_s24, %s1264_s24, %s1265_s26  }
  0x1c   : > { %p189_p4 = scmp.lt.s32.totalorder %s1262_s18, 3 }
  0x1e   : > { %p190_p5 = pnand %p1110_p9, %p189_p4 }
  0x1f   : > { %s195_s27 = sand.u32 (!%p190_p5), 1, %s1254_s16  }
  0x20   : > { %193 = sbr.rel (%p190_p5) target bundleno = 786 (0x312), region = 36  ;;  %s1111_s28 = sshll.u32 (!%p190_p5), %s195_s27, 6 }
  0x21   : > { %s196_s29 = scalar_lea.sflag (!%p190_p5), [#allocation3], %s195_s27  ;;  %s1362_s30 = scalar_lea.vmem (!%p190_p5), [#allocation2], %s1111_s28 }
  0x25   : > { %1245 = dma.done.wait (%p1332_p7), %s196_s29, 1024  }
  0x26   : > { %1247 = vsyncadd (%p1332_p7), %s196_s29, 4294966272  ;;  %v249_v0 = vlaneseq  ;;  %p229_p6 = scmp.lt.s32.totalorder %s1311_s19, 1  ;;  %v246_v13 = vld [vmem:[%s1607_s2] sm:$0xff]  ;;  %vm312_vm0 = vcmask 31744   ;;  %vm543_vm1 = vcmask 1043456   ;;  %vm672_vm2 = vcmask 1041409  }
  0x27   : > { %v1163_v49 = vld [vmem:[%s1608_s3] ss:$0 sm:$0xff]  ;;  %vm674_vm3 = vcmask 1042434   ;;  %vm676_vm4 = vcmask 1043459   ;;  %vm678_vm5 = vcmask 1044484   ;;  %vm680_vm6 = vcmask 1045509  }
  0x28   : > { %v250_v1 = vshrl.u32 %v249_v0, 7  ;;  %s1618_s19 = smov (!%p229_p6, %s1311_s19), 1  ;;  %vm682_vm7 = vcmask 1046534   ;;  %vm684_vm8 = vcmask 1047559  }
  0x29   : > { %s1112_s18 = sshll.u32 %s1618_s19, 3 }
  0x2a   : > { %1161 = vset.pattern.permute.xlu1 %v250_v1  ;;  %1160 = vset.pattern.permute.xlu0 %v250_v1  ;;  %s232_s7 = scalar_lea.vmem %s1606_s1, %s1112_s18  ;;  %s236_s13 = scalar_lea.vmem %s1609_s4, %s1112_s18 }
  0x2b   : > { %1162 = vset.pattern.permute.xlu2 %v250_v1  ;;  %v245_v2 = vld [vmem:[%s232_s7] sm:$0xff] }
  0x2c   : > { %v262_v3 = vperm.slane %v245_v2, 2  ;;  %v248_v4 = vperm.slane %v245_v2, 0  ;;  %v276_v5 = vperm.slane %v245_v2, 4  ;;  %v269_v6 = vperm.slane %v245_v2, 3 }
  0x2d   : > { %v255_v7 = vperm.slane %v245_v2, 1  ;;  %v283_v8 = vperm.slane %v245_v2, 5  ;;  %v297_v9 = vperm.slane %v245_v2, 7  ;;  %v290_v10 = vperm.slane %v245_v2, 6 }
  0x32   : > { %267 = vperm.xlu1 %1161, %v262_v3   ;;  %253 = vperm.xlu0 %1160, %v248_v4  }
  0x33   : > { %281 = vperm.xlu2 %1162, %v276_v5  }
  0x3a   : > { %274 = vperm.xlu1 %1161, %v269_v6   ;;  %260 = vperm.xlu0 %1160, %v255_v7  }
  0x3b   : > { %288 = vperm.xlu2 %1162, %v283_v8  }
  0x42   : > { %302 = vperm.xlu1 %1161, %v297_v9   ;;  %295 = vperm.xlu0 %1160, %v290_v10  }
  0x8d   : > { %v282_v11 = vpop.permute.xlu2 %281 }
  0x8e   : > { %v308_v18 = vmul.f32 %v282_v11, %v246_v13 }
  0x90   : > { %v341_v26 = vsel %vm312_vm0, %v308_v18, 0.0 }
  0x91   : > { %v342_v31 = vrot.slane %v341_v26, 4 }
  0x93   : > { %v343_v41 = vadd.f32 %v342_v31, %v341_v26 }
  0x95   : > { %v289_v12 = vpop.permute.xlu2 %288  ;;  %v344_v54 = vrot.slane %v343_v41, 2 }
  0x96   : > { %v309_v14 = vmul.f32 %v289_v12, %v246_v13 }
  0x97   : > { %v345_v5 = vadd.f32 %v344_v54, %v343_v41 }
  0x98   : > { %v348_v15 = vsel %vm312_vm0, %v309_v14, 0.0 }
  0x99   : > { %v349_v16 = vrot.slane %v348_v15, 4 }
  0x9b   : > { %v350_v17 = vadd.f32 %v349_v16, %v348_v15 }
  0x9d   : > { %v351_v25 = vrot.slane %v350_v17, 2 }
  0x9f   : > { %v352_v32 = vadd.f32 %v351_v25, %v350_v17  ;;  %v346_v17 = vrot.slane %v345_v5, 1 }
  0xa1   : > { %v353_v42 = vrot.slane %v352_v32, 1 }
  0xa3   : > { %v354_v55 = vadd.f32 %v353_v42, %v352_v32  ;;  %v1396_v42 = vld [vmem:[%s1362_s30] sm:$0xff] }
  0xa4   : > { %v268_v19 = vpop.permute.xlu1 %267  ;;  %v254_v20 = vpop.permute.xlu0 %253 }
  0xa5   : > { %v306_v21 = vmul.f32 %v268_v19, %v246_v13  ;;  %v304_v22 = vmul.f32 %v254_v20, %v246_v13  ;;  %v377_v8 = vadd.f32 %v1163_v49, %v354_v55 }
  0xa7   : > { %v327_v23 = vsel %vm312_vm0, %v306_v21, 0.0  ;;  %v313_v24 = vsel %vm312_vm0, %v304_v22, 0.0  ;;  %v415_v18 = vperm.slane %v377_v8, 0 }
  0xa8   : > { %v328_v27 = vrot.slane %v327_v23, 4  ;;  %v314_v28 = vrot.slane %v313_v24, 4 }
  0xaa   : > { %v329_v29 = vadd.f32 %v328_v27, %v327_v23  ;;  %v315_v30 = vadd.f32 %v314_v28, %v313_v24  ;;  %v347_v27 = vadd.f32 %v346_v17, %v345_v5 }
  0xac   : > { %v330_v33 = vrot.slane %v329_v29, 2  ;;  %v316_v34 = vrot.slane %v315_v30, 2  ;;  %v275_v35 = vpop.permute.xlu1 %274  ;;  %v261_v36 = vpop.permute.xlu0 %260  ;;  %v376_v31 = vadd.f32 %v1163_v49, %v347_v27 }
  0xad   : > { %v307_v37 = vmul.f32 %v275_v35, %v246_v13  ;;  %v305_v38 = vmul.f32 %v261_v36, %v246_v13 }
  0xae   : > { %v331_v39 = vadd.f32 %v330_v33, %v329_v29  ;;  %v317_v40 = vadd.f32 %v316_v34, %v315_v30  ;;  %v408_v34 = vperm.slane %v376_v31, 0 }
  0xaf   : > { %v334_v43 = vsel %vm312_vm0, %v307_v37, 0.0  ;;  %v320_v44 = vsel %vm312_vm0, %v305_v38, 0.0  ;;  %v1266_v38 = vmov 839922192  }
  0xb0   : > { %v332_v45 = vrot.slane %v331_v39, 1  ;;  %v318_v46 = vrot.slane %v317_v40, 1  ;;  %v335_v47 = vrot.slane %v334_v43, 4  ;;  %v321_v48 = vrot.slane %v320_v44, 4 }
  0xb2   : > { %v336_v50 = vadd.f32 %v335_v47, %v334_v43  ;;  %v322_v51 = vadd.f32 %v321_v48, %v320_v44  ;;  %v333_v52 = vadd.f32 %v332_v45, %v331_v39  ;;  %v319_v53 = vadd.f32 %v318_v46, %v317_v40  ;;  %v1401_v46 = vld [vmem:[%s1362_s30 + $0x18] sm:$0xff] }
  0xb3   : > { %v445_v39 = vunpack.c.l.s4 %v1266_v38 }
  0xb4   : > { %v337_v56 = vrot.slane %v336_v50, 2  ;;  %v323_v57 = vrot.slane %v322_v51, 2  ;;  %v303_v58 = vpop.permute.xlu1 %302  ;;  %v296_v59 = vpop.permute.xlu0 %295  ;;  %v374_v60 = vadd.f32 %v1163_v49, %v333_v52  ;;  %v372_v61 = vadd.f32 %v1163_v49, %v319_v53 }
  0xb5   : > { %v311_v62 = vmul.f32 %v303_v58, %v246_v13  ;;  %v310_v63 = vmul.f32 %v296_v59, %v246_v13  ;;  %v1393_v40 = vunpack.c.0.s8 %v445_v39 }
  0xb6   : > { %v338_v1 = vadd.f32 %v337_v56, %v336_v50  ;;  %v324_v2 = vadd.f32 %v323_v57, %v322_v51  ;;  %v394_v3 = vperm.slane %v374_v60, 0  ;;  %v380_v4 = vperm.slane %v372_v61, 0  ;;  %v1406_v50 = vld [vmem:[%s1362_s30 + $0x10] sm:$0xff] }
  0xb7   : > { %v362_v6 = vsel %vm312_vm0, %v311_v62, 0.0  ;;  %v355_v7 = vsel %vm312_vm0, %v310_v63, 0.0  ;;  %v1414_v61 = vld [vmem:[%s1362_s30 + $0x30] sm:$0xff] }
  0xb8   : > { %v339_v9 = vrot.slane %v338_v1, 1  ;;  %v325_v10 = vrot.slane %v324_v2, 1  ;;  %v363_v11 = vrot.slane %v362_v6, 4  ;;  %v356_v12 = vrot.slane %v355_v7, 4  ;;  %399 = vperm.xlu1 %1161, %v394_v3   ;;  %385 = vperm.xlu2 %1162, %v380_v4  }
  0xba   : > { %v364_v14 = vadd.f32 %v363_v11, %v362_v6  ;;  %v357_v15 = vadd.f32 %v356_v12, %v355_v7  ;;  %v340_v16 = vadd.f32 %v339_v9, %v338_v1  ;;  %v326_v13 = vadd.f32 %v325_v10, %v324_v2  ;;  %v1419_v2 = vld [vmem:[%s1362_s30 + $0x8] sm:$0xff] }
  0xbc   : > { %v365_v19 = vrot.slane %v364_v14, 2  ;;  %v358_v20 = vrot.slane %v357_v15, 2  ;;  %v375_v21 = vadd.f32 %v1163_v49, %v340_v16  ;;  %v373_v22 = vadd.f32 %v1163_v49, %v326_v13 }
  0xbe   : > { %v359_v23 = vadd.f32 %v358_v20, %v357_v15  ;;  %v401_v24 = vperm.slane %v375_v21, 0  ;;  %v387_v25 = vperm.slane %v373_v22, 0  ;;  %v366_v26 = vadd.f32 %v365_v19, %v364_v14  ;;  %v1428_v22 = vld [vmem:[%s1362_s30 + $0x28] sm:$0xff] }
  0xc0   : > { %v360_v28 = vrot.slane %v359_v23, 1  ;;  %420 = vperm.xlu1 %1161, %v415_v18   ;;  %406 = vperm.xlu2 %1162, %v401_v24   ;;  %v367_v30 = vrot.slane %v366_v26, 1  ;;  %v1431_v24 = vld [vmem:[%s1362_s30 + $0x20] sm:$0xff] }
  0xc1   : > { %392 = vperm.xlu0 %1160, %v387_v25  }
  0xc2   : > { %v361_v29 = vadd.f32 %v360_v28, %v359_v23  ;;  %v368_v35 = vadd.f32 %v367_v30, %v366_v26 }
  0xc4   : > { %v378_v32 = vadd.f32 %v1163_v49, %v361_v29  ;;  %v379_v36 = vadd.f32 %v1163_v49, %v368_v35 }
  0xc6   : > { %v422_v33 = vperm.slane %v378_v32, 0  ;;  %v429_v37 = vperm.slane %v379_v36, 0 }
  0xc8   : > { %427 = vperm.xlu2 %1162, %v422_v33  }
  0xc9   : > { %413 = vperm.xlu0 %1160, %v408_v34  }
  0xd1   : > { %434 = vperm.xlu0 %1160, %v429_v37  }
 0x112   : > { %v386_v41 = vpop.permute.xlu2 %385 }
 0x113   : > { %v447_v43 = vperm.slane %v386_v41, %v1393_v40 }
 0x115   : > { %v484_v44 = vmul.f32 %v447_v43, %v1396_v42 }
 0x117   : > { %500 = vst [vmem:[#allocation1] ss:$2 sm:$0xff] %v484_v44 }
 0x11a   : > { %v407_v45 = vpop.permute.xlu2 %406 }
 0x11b   : > { %v459_v47 = vperm.slane %v407_v45, %v1393_v40 }
 0x11d   : > { %v487_v48 = vmul.f32 %v459_v47, %v1401_v46 }
 0x11e   : > { %v501_v53 = vld.sshfl [vmem:[#allocation1] sm:$0xff pattern:$0x75316420]  ;;  %v502_v55 = vld.sshfl [vmem:[#allocation1 + $0x8] sm:$0xff pattern:$0x75316420] }
 0x11f   : > { %512 = vst [vmem:[#allocation1 + $0x30] ss:$2 sm:$0xff] %v487_v48  ;;  %v544_v58 = vsel %vm543_vm1, %v501_v53, 0.0  ;;  %v551_v60 = vsel %vm543_vm1, %v502_v55, 0.0 }
 0x120   : > { %v545_v3 = vrot.slane %v544_v58, 4  ;;  %v552_v5 = vrot.slane %v551_v60, 4 }
 0x122   : > { %v428_v54 = vpop.permute.xlu2 %427  ;;  %v546_v15 = vadd.f32 %v545_v3, %v544_v58  ;;  %v553_v13 = vadd.f32 %v552_v5, %v551_v60 }
 0x123   : > { %v471_v59 = vperm.slane %v428_v54, %v1393_v40 }
 0x124   : > { %v547_v25 = vrot.slane %v546_v15, 2  ;;  %v554_v28 = vrot.slane %v553_v13, 2 }
 0x125   : > { %v490_v6 = vmul.f32 %v471_v59, %v1414_v61 }
 0x126   : > { %v513_v56 = vld.sshfl [vmem:[#allocation1 + $0x30] sm:$0xff pattern:$0x75316420]  ;;  %v514_v57 = vld.sshfl [vmem:[#allocation1 + $0x38] sm:$0xff pattern:$0x75316420]  ;;  %v548_v38 = vadd.f32 %v547_v25, %v546_v15  ;;  %v555_v44 = vadd.f32 %v554_v28, %v553_v13 }
 0x127   : > { %v586_v62 = vsel %vm543_vm1, %v513_v56, 0.0  ;;  %v593_v63 = vsel %vm543_vm1, %v514_v57, 0.0  ;;  %v1441_v57 = vld [vmem:[%s1362_s30 + $0x38] sm:$0xff] }
 0x128   : > { %v587_v7 = vrot.slane %v586_v62, 4  ;;  %v594_v8 = vrot.slane %v593_v63, 4  ;;  %v549_v58 = vrot.slane %v548_v38, 1  ;;  %v556_v60 = vrot.slane %v555_v44, 1 }
 0x12a   : > { %v400_v49 = vpop.permute.xlu1 %399  ;;  %v588_v18 = vadd.f32 %v587_v7, %v586_v62  ;;  %v595_v19 = vadd.f32 %v594_v8, %v593_v63  ;;  %v1447_v15 = vadd.f32 %v556_v60, %v555_v44 }
 0x12b   : > { %v455_v51 = vperm.slane %v400_v49, %v1393_v40 }
 0x12c   : > { %v589_v30 = vrot.slane %v588_v18, 2  ;;  %v596_v31 = vrot.slane %v595_v19, 2 }
 0x12d   : > { %v486_v52 = vmul.f32 %v455_v51, %v1406_v50 }
 0x12e   : > { %v590_v51 = vadd.f32 %v589_v30, %v588_v18 }
 0x12f   : > { %508 = vst [vmem:[#allocation1 + $0x20] ss:$2 sm:$0xff] %v486_v52  ;;  %v597_v52 = vadd.f32 %v596_v31, %v595_v19 }
 0x130   : > { %v591_v7 = vrot.slane %v590_v51, 1 }
 0x131   : > { %v598_v8 = vrot.slane %v597_v52, 1 }
 0x132   : > { %v421_v14 = vpop.permute.xlu1 %420 }
 0x133   : > { %v393_v1 = vpop.permute.xlu0 %392  ;;  %v467_v21 = vperm.slane %v421_v14, %v1393_v40 }
 0x134   : > { %v451_v4 = vperm.slane %v393_v1, %v1393_v40 }
 0x135   : > { %v489_v32 = vmul.f32 %v467_v21, %v1428_v22 }
 0x136   : > { %v509_v9 = vld.sshfl [vmem:[#allocation1 + $0x20] sm:$0xff pattern:$0x75316420]  ;;  %v510_v10 = vld.sshfl [vmem:[#allocation1 + $0x28] sm:$0xff pattern:$0x75316420]  ;;  %v485_v11 = vmul.f32 %v451_v4, %v1419_v2 }
 0x137   : > { %521 = vst [vmem:[#allocation1 + $0x20] ss:$2 sm:$0xff] %v490_v6  ;;  %v572_v12 = vsel %vm543_vm1, %v509_v9, 0.0  ;;  %v579_v17 = vsel %vm543_vm1, %v510_v10, 0.0 }
 0x138   : > { %v573_v16 = vrot.slane %v572_v12, 4  ;;  %504 = vst [vmem:[#allocation1 + $0x10] ss:$2 sm:$0xff] %v485_v11  ;;  %v580_v26 = vrot.slane %v579_v17, 4  ;;  %v1445_v11 = vadd.f32 %v549_v58, %v548_v38 }
 0x13a   : > { %v574_v20 = vadd.f32 %v573_v16, %v572_v12  ;;  %v581_v39 = vadd.f32 %v580_v26, %v579_v17 }
 0x13b   : > { %v414_v23 = vpop.permute.xlu0 %413 }
 0x13c   : > { %v463_v27 = vperm.slane %v414_v23, %v1393_v40  ;;  %v575_v29 = vrot.slane %v574_v20, 2  ;;  %v582_v62 = vrot.slane %v581_v39, 2 }
 0x13e   : > { %v488_v33 = vmul.f32 %v463_v27, %v1431_v24  ;;  %v522_v34 = vld.sshfl [vmem:[#allocation1 + $0x20] sm:$0xff pattern:$0x75316420]  ;;  %v523_v35 = vld.sshfl [vmem:[#allocation1 + $0x28] sm:$0xff pattern:$0x75316420]  ;;  %v576_v49 = vadd.f32 %v575_v29, %v574_v20  ;;  %v583_v16 = vadd.f32 %v582_v62, %v581_v39  ;;  %v1457_v39 = vadd.f32 %v591_v7, %v590_v51 }
 0x13f   : > { %v505_v36 = vld.sshfl [vmem:[#allocation1 + $0x10] sm:$0xff pattern:$0x75316420]  ;;  %v506_v37 = vld.sshfl [vmem:[#allocation1 + $0x18] sm:$0xff pattern:$0x75316420] }
 0x140   : > { %518 = vst [vmem:[#allocation1 + $0x10] ss:$2 sm:$0xff] %v489_v32  ;;  %v558_v41 = vsel %vm543_vm1, %v505_v36, 0.0  ;;  %v565_v43 = vsel %vm543_vm1, %v506_v37, 0.0  ;;  %v628_v48 = vsel %vm543_vm1, %v522_v34, 0.0  ;;  %v635_v53 = vsel %vm543_vm1, %v523_v35, 0.0 }
 0x141   : > { %v559_v45 = vrot.slane %v558_v41, 4  ;;  %v566_v47 = vrot.slane %v565_v43, 4  ;;  %515 = vst [vmem:[#allocation1] ss:$2 sm:$0xff] %v488_v33  ;;  %v629_v63 = vrot.slane %v628_v48, 4  ;;  %v636_v4 = vrot.slane %v635_v53, 4 }
 0x142   : > { %v577_v6 = vrot.slane %v576_v49, 1  ;;  %v584_v35 = vrot.slane %v583_v16, 1 }
 0x143   : > { %v560_v54 = vadd.f32 %v559_v45, %v558_v41  ;;  %v567_v55 = vadd.f32 %v566_v47, %v565_v43  ;;  %v435_v56 = vpop.permute.xlu0 %434  ;;  %v630_v17 = vadd.f32 %v629_v63, %v628_v48  ;;  %v637_v23 = vadd.f32 %v636_v4, %v635_v53 }
 0x144   : > { %v475_v59 = vperm.slane %v435_v56, %v1393_v40  ;;  %v1459_v48 = vadd.f32 %v577_v6, %v576_v49  ;;  %v1461_v53 = vadd.f32 %v598_v8, %v597_v52  ;;  %v585_v60 = vadd.f32 %v584_v35, %v583_v16 }
 0x145   : > { %v561_v1 = vrot.slane %v560_v54, 2  ;;  %v568_v3 = vrot.slane %v567_v55, 2  ;;  %v631_v38 = vrot.slane %v630_v17, 2  ;;  %v638_v44 = vrot.slane %v637_v23, 2 }
 0x146   : > { %v491_v5 = vmul.f32 %v475_v59, %v1441_v57 }
 0x147   : > { %v519_v9 = vld.sshfl [vmem:[#allocation1 + $0x10] sm:$0xff pattern:$0x75316420]  ;;  %v520_v10 = vld.sshfl [vmem:[#allocation1 + $0x18] sm:$0xff pattern:$0x75316420]  ;;  %v562_v12 = vadd.f32 %v561_v1, %v560_v54  ;;  %v569_v14 = vadd.f32 %v568_v3, %v567_v55  ;;  %v632_v62 = vadd.f32 %v631_v38, %v630_v17 }
 0x148   : > { %524 = vst [vmem:[#allocation1 + $0x30] ss:$2 sm:$0xff] %v491_v5  ;;  %v516_v40 = vld.sshfl [vmem:[#allocation1] sm:$0xff pattern:$0x75316420]  ;;  %v614_v13 = vsel %vm543_vm1, %v519_v9, 0.0 }
 0x149   : > { %v517_v18 = vld.sshfl [vmem:[#allocation1 + $0x8] sm:$0xff pattern:$0x75316420]  ;;  %v563_v19 = vrot.slane %v562_v12, 1  ;;  %v570_v20 = vrot.slane %v569_v14, 1  ;;  %v600_v21 = vsel %vm543_vm1, %v516_v40, 0.0 }
 0x14a   : > { %v601_v25 = vrot.slane %v600_v21, 4  ;;  %v607_v26 = vsel %vm543_vm1, %v517_v18, 0.0  ;;  %v615_v27 = vrot.slane %v614_v13, 4  ;;  %v621_v28 = vsel %vm543_vm1, %v520_v10, 0.0 }
 0x14b   : > { %v1453_v29 = vadd.f32 %v563_v19, %v562_v12  ;;  %v1455_v30 = vadd.f32 %v570_v20, %v569_v14  ;;  %v608_v31 = vrot.slane %v607_v26, 4  ;;  %v622_v32 = vrot.slane %v621_v28, 4 }
 0x14c   : > { %v602_v33 = vadd.f32 %v601_v25, %v600_v21  ;;  %v616_v34 = vadd.f32 %v615_v27, %v614_v13  ;;  %v639_v14 = vadd.f32 %v638_v44, %v637_v23 }
 0x14d   : > { %v609_v36 = vadd.f32 %v608_v31, %v607_v26  ;;  %v623_v37 = vadd.f32 %v622_v32, %v621_v28  ;;  %v673_v54 = vsel %vm672_vm2, %v1453_v29, %v1445_v11  ;;  %v686_v55 = vsel %vm672_vm2, %v1455_v30, %v1447_v15 }
 0x14e   : > { %v603_v41 = vrot.slane %v602_v33, 2  ;;  %v617_v43 = vrot.slane %v616_v34, 2  ;;  %v675_v4 = vsel %vm674_vm3, %v1459_v48, %v673_v54  ;;  %v687_v8 = vsel %vm674_vm3, %v585_v60, %v686_v55 }
 0x14f   : > { %v525_v45 = vld.sshfl [vmem:[#allocation1 + $0x30] sm:$0xff pattern:$0x75316420]  ;;  %v526_v47 = vld.sshfl [vmem:[#allocation1 + $0x38] sm:$0xff pattern:$0x75316420]  ;;  %v677_v17 = vsel %vm676_vm4, %v1457_v39, %v675_v4  ;;  %v688_v18 = vsel %vm676_vm4, %v1461_v53, %v687_v8 }
 0x150   : > { %v604_v56 = vadd.f32 %v603_v41, %v602_v33  ;;  %v610_v51 = vrot.slane %v609_v36, 2  ;;  %v618_v58 = vadd.f32 %v617_v43, %v616_v34  ;;  %v624_v59 = vrot.slane %v623_v37, 2 }
 0x151   : > { %v642_v63 = vsel %vm543_vm1, %v525_v45, 0.0  ;;  %v649_v49 = vsel %vm543_vm1, %v526_v47, 0.0  ;;  %v633_v26 = vrot.slane %v632_v62, 1  ;;  %v640_v27 = vrot.slane %v639_v14, 1 }
 0x152   : > { %v605_v52 = vrot.slane %v604_v56, 1  ;;  %v611_v1 = vadd.f32 %v610_v51, %v609_v36  ;;  %v625_v3 = vadd.f32 %v624_v59, %v623_v37  ;;  %v619_v5 = vrot.slane %v618_v58, 1 }
 0x153   : > { %v643_v6 = vrot.slane %v642_v63, 4  ;;  %v650_v7 = vrot.slane %v649_v49, 4  ;;  %v634_v37 = vadd.f32 %v633_v26, %v632_v62  ;;  %v641_v38 = vadd.f32 %v640_v27, %v639_v14 }
 0x154   : > { %v606_v9 = vadd.f32 %v605_v52, %v604_v56  ;;  %v612_v10 = vrot.slane %v611_v1, 1  ;;  %v626_v12 = vrot.slane %v625_v3, 1  ;;  %v620_v19 = vadd.f32 %v619_v5, %v618_v58 }
 0x155   : > { %v644_v40 = vadd.f32 %v643_v6, %v642_v63  ;;  %v651_v16 = vadd.f32 %v650_v7, %v649_v49 }
 0x156   : > { %v613_v13 = vadd.f32 %v612_v10, %v611_v1  ;;  %v627_v20 = vadd.f32 %v626_v12, %v625_v3  ;;  %v679_v28 = vsel %vm678_vm5, %v606_v9, %v677_v17 }
 0x157   : > { %v645_v21 = vrot.slane %v644_v40, 2  ;;  %v652_v25 = vrot.slane %v651_v16, 2  ;;  %v681_v35 = vsel %vm680_vm6, %v620_v19, %v679_v28 }
 0x158   : > { %v689_v23 = vsel %vm678_vm5, %v613_v13, %v688_v18  ;;  %v683_v44 = vsel %vm682_vm7, %v634_v37, %v681_v35 }
 0x159   : > { %v646_v31 = vadd.f32 %v645_v21, %v644_v40  ;;  %v653_v32 = vadd.f32 %v652_v25, %v651_v16  ;;  %v690_v36 = vsel %vm680_vm6, %v627_v20, %v689_v23 }
 0x15a   : > { %v691_v45 = vsel %vm682_vm7, %v641_v38, %v690_v36 }
 0x15b   : > { %v647_v33 = vrot.slane %v646_v31, 1  ;;  %v654_v34 = vrot.slane %v653_v32, 1 }
 0x15d   : > { %v648_v41 = vadd.f32 %v647_v33, %v646_v31  ;;  %v655_v43 = vadd.f32 %v654_v34, %v653_v32 }
 0x15f   : > { %v685_v47 = vsel %vm684_vm8, %v648_v41, %v683_v44  ;;  %v692_v54 = vsel %vm684_vm8, %v655_v43, %v691_v45 }
 0x160   : > { %v695_v55 = vmax.f32 %v685_v47, %v692_v54 }
 0x162   : > { %696 = vmax.xlane.f32.xlu1 %v695_v55 }
 0x1d5   : > { %v697_v56 = vpop.xlane.xlu1 %696 }
 0x1d6   : > { %v699_v51 = vrot.slane %v697_v56, 1  ;;  %v700_v58 = vrot.slane %v697_v56, 2  ;;  %v701_v59 = vrot.slane %v697_v56, 3  ;;  %v714_v62 = vsub.f32 %v1445_v11, %v697_v56 }
 0x1d7   : > { %v715_v63 = vsub.f32 %v1447_v15, %v697_v56  ;;  %v702_v49 = vrot.slane %v697_v56, 4  ;;  %v703_v5 = vrot.slane %v697_v56, 5  ;;  %v704_v11 = vrot.slane %v697_v56, 6 }
 0x1d8   : > { %v716_v52 = vsub.f32 %v1453_v29, %v699_v51  ;;  %v717_v1 = vsub.f32 %v1455_v30, %v699_v51  ;;  %v730_v3 = vmul.f32 1.442695, %v714_v62  ;;  %v718_v6 = vsub.f32 %v1459_v48, %v700_v58 }
 0x1d9   : > { %v732_v4 = vmul.f32 1.442695, %v715_v63  ;;  %v719_v7 = vsub.f32 %v585_v60, %v700_v58  ;;  %v720_v12 = vsub.f32 %v1457_v39, %v701_v59  ;;  %v721_v14 = vsub.f32 %v1461_v53, %v701_v59 }
 0x1da   : > { %v734_v8 = vmul.f32 1.442695, %v716_v52  ;;  %v736_v10 = vmul.f32 1.442695, %v717_v1  ;;  %1164 = vpow2.f32 %v730_v3  ;;  %v722_v15 = vsub.f32 %v606_v9, %v702_v49 }
 0x1db   : > { %1166 = vpow2.f32 %v732_v4  ;;  %v705_v40 = vrot.slane %v697_v56, 7  ;;  %v723_v29 = vsub.f32 %v613_v13, %v702_v49  ;;  %v724_v16 = vsub.f32 %v620_v19, %v703_v5 }
 0x1dc   : > { %1168 = vpow2.f32 %v734_v8  ;;  %v738_v30 = vmul.f32 1.442695, %v718_v6  ;;  %v740_v17 = vmul.f32 1.442695, %v719_v7  ;;  %v725_v18 = vsub.f32 %v627_v20, %v703_v5 }
 0x1dd   : > { %1170 = vpow2.f32 %v736_v10  ;;  %v742_v48 = vmul.f32 1.442695, %v720_v12  ;;  %v744_v60 = vmul.f32 1.442695, %v721_v14  ;;  %v726_v21 = vsub.f32 %v634_v37, %v704_v11 }
 0x1de   : > { %1172 = vpow2.f32 %v738_v30  ;;  %v746_v25 = vmul.f32 1.442695, %v722_v15  ;;  %v727_v39 = vsub.f32 %v641_v38, %v704_v11  ;;  %v748_v53 = vmul.f32 1.442695, %v723_v29 }
 0x1df   : > { %1174 = vpow2.f32 %v740_v17  ;;  %v728_v9 = vsub.f32 %v648_v41, %v705_v40  ;;  %v750_v27 = vmul.f32 1.442695, %v724_v16  ;;  %v729_v19 = vsub.f32 %v655_v43, %v705_v40 }
 0x1e0   : > { %v1493_v26 = vpop.eup %1164  ;;  %1176 = vpow2.f32 %v742_v48  ;;  %v752_v28 = vmul.f32 1.442695, %v725_v18  ;;  %v754_v23 = vmul.f32 1.442695, %v726_v21  ;;  %v756_v32 = vmul.f32 1.442695, %v727_v39 }
 0x1e1   : > { %v1495_v13 = vpop.eup %1166  ;;  %1178 = vpow2.f32 %v744_v60  ;;  %v758_v35 = vmul.f32 1.442695, %v728_v9  ;;  %v760_v38 = vmul.f32 1.442695, %v729_v19 }
 0x1e2   : > { %v1497_v20 = vpop.eup %1168  ;;  %1180 = vpow2.f32 %v746_v25 }
 0x1e3   : > { %v1499_v31 = vpop.eup %1170  ;;  %1182 = vpow2.f32 %v748_v53  ;;  %v778_v33 = vrot.slane %v1497_v20, 7 }
 0x1e4   : > { %v1173_v34 = vpop.eup %1172  ;;  %1184 = vpow2.f32 %v750_v27  ;;  %v792_v36 = vrot.slane %v1499_v31, 7 }
 0x1e5   : > { %v1175_v37 = vpop.eup %1174  ;;  %1186 = vpow2.f32 %v752_v28  ;;  %v779_v41 = vsel %vm672_vm2, %v778_v33, %v1493_v26  ;;  %v780_v43 = vrot.slane %v1173_v34, 6 }
 0x1e6   : > { %v1505_v44 = vpop.eup %1176  ;;  %1188 = vpow2.f32 %v754_v23  ;;  %v793_v45 = vsel %vm672_vm2, %v792_v36, %v1495_v13  ;;  %v794_v47 = vrot.slane %v1175_v37, 6 }
 0x1e7   : > { %v1509_v54 = vpop.eup %1178  ;;  %1190 = vpow2.f32 %v756_v32  ;;  %v781_v55 = vsel %vm674_vm3, %v780_v43, %v779_v41  ;;  %v782_v56 = vrot.slane %v1505_v44, 5 }
 0x1e8   : > { %v1181_v51 = vpop.eup %1180  ;;  %1192 = vpow2.f32 %v758_v35  ;;  %v795_v58 = vsel %vm674_vm3, %v794_v47, %v793_v45  ;;  %v796_v59 = vrot.slane %v1509_v54, 5 }
 0x1e9   : > { %v1183_v62 = vpop.eup %1182  ;;  %1194 = vpow2.f32 %v760_v38  ;;  %v783_v63 = vsel %vm676_vm4, %v782_v56, %v781_v55  ;;  %v784_v49 = vrot.slane %v1181_v51, 4 }
 0x1ea   : > { %v1185_v52 = vpop.eup %1184  ;;  %v797_v1 = vsel %vm676_vm4, %v796_v59, %v795_v58  ;;  %v798_v3 = vrot.slane %v1183_v62, 4 }
 0x1eb   : > { %v1187_v4 = vpop.eup %1186  ;;  %v785_v5 = vsel %vm678_vm5, %v784_v49, %v783_v63  ;;  %v786_v6 = vrot.slane %v1185_v52, 3 }
 0x1ec   : > { %v1189_v7 = vpop.eup %1188  ;;  %v799_v8 = vsel %vm678_vm5, %v798_v3, %v797_v1  ;;  %v800_v10 = vrot.slane %v1187_v4, 3 }
 0x1ed   : > { %v1191_v12 = vpop.eup %1190  ;;  %v787_v14 = vsel %vm680_vm6, %v786_v6, %v785_v5  ;;  %v788_v11 = vrot.slane %v1189_v7, 2 }
 0x1ee   : > { %v1520_v15 = vpop.eup %1192  ;;  %v801_v40 = vsel %vm680_vm6, %v800_v10, %v799_v8  ;;  %v802_v29 = vrot.slane %v1191_v12, 2 }
 0x1ef   : > { %v1195_v16 = vpop.eup %1194  ;;  %v789_v30 = vsel %vm682_vm7, %v788_v11, %v787_v14  ;;  %v790_v17 = vrot.slane %v1520_v15, 1 }
 0x1f0   : > { %v803_v18 = vsel %vm682_vm7, %v802_v29, %v801_v40  ;;  %v804_v48 = vrot.slane %v1195_v16, 1 }
 0x1f1   : > { %v791_v60 = vsel %vm684_vm8, %v790_v17, %v789_v30 }
 0x1f2   : > { %v805_v21 = vsel %vm684_vm8, %v804_v48, %v803_v18 }
 0x1f3   : > { %v808_v25 = vadd.f32 %v805_v21, %v791_v60 }
 0x1f5   : > { %809 = vadd.xlane.f32.xlu2 %v808_v25 }
 0x268   : > { %v810_v39 = vpop.xlane.xlu2 %809 }
 0x269   : > { %1196 = vrcp.f32 %v810_v39 }
 0x26f   : > { %v1528_v53 = vpop.eup %1196 }
 0x270   : > { %v828_v9 = vmul.f32 %v1528_v53, %v1493_v26  ;;  %v829_v27 = vmul.f32 %v1528_v53, %v1495_v13  ;;  %v816_v19 = vrot.slane %v1528_v53, 4  ;;  %v814_v28 = vrot.slane %v1528_v53, 2 }
 0x271   : > { %v818_v23 = vrot.slane %v1528_v53, 6  ;;  %v813_v32 = vrot.slane %v1528_v53, 1  ;;  %v817_v43 = vrot.slane %v1528_v53, 5  ;;  %v815_v58 = vrot.slane %v1528_v53, 3 }
 0x272   : > { %v845_v33 = vperm.slane %v829_v27, 0  ;;  %v837_v35 = vmul.f32 %v1183_v62, %v816_v19  ;;  %v832_v36 = vmul.f32 %v1173_v34, %v814_v28  ;;  %v833_v38 = vmul.f32 %v1175_v37, %v814_v28 }
 0x273   : > { %v841_v41 = vmul.f32 %v1191_v12, %v818_v23  ;;  %v844_v45 = vperm.slane %v828_v9, 0  ;;  %v836_v55 = vmul.f32 %v1181_v51, %v816_v19  ;;  %v830_v56 = vmul.f32 %v1497_v20, %v813_v32 }
 0x274   : > { %v876_v26 = vrot.slane %v845_v33, 4  ;;  %v853_v47 = vperm.slane %v837_v35, 0  ;;  %v849_v13 = vperm.slane %v833_v38, 0  ;;  %v848_v63 = vperm.slane %v832_v36, 0 }
 0x275   : > { %v857_v49 = vperm.slane %v841_v41, 0  ;;  %v831_v62 = vmul.f32 %v1499_v31, %v813_v32  ;;  %v839_v3 = vmul.f32 %v1187_v4, %v817_v43  ;;  %v840_v5 = vmul.f32 %v1189_v7, %v818_v23 }
 0x276   : > { %v884_v59 = vsel %vm543_vm1, %v844_v45, %v876_v26  ;;  %v880_v37 = vrot.slane %v853_v47, 4  ;;  %v878_v1 = vrot.slane %v849_v13, 4  ;;  %v852_v51 = vperm.slane %v836_v55, 0 }
 0x277   : > { %v900_v34 = vmul.f32 %v884_v59, %v1396_v42  ;;  %v847_v6 = vperm.slane %v831_v62, 0  ;;  %v838_v20 = vmul.f32 %v1185_v52, %v817_v43  ;;  %v846_v10 = vperm.slane %v830_v56, 0 }
 0x278   : > { %v886_v8 = vsel %vm543_vm1, %v848_v63, %v878_v1  ;;  %v855_v14 = vperm.slane %v839_v3, 0  ;;  %v819_v40 = vrot.slane %v1528_v53, 7  ;;  %v888_v31 = vsel %vm543_vm1, %v852_v51, %v880_v37 }
 0x279   : > { %916 = vst [vmem:[#allocation1] ss:$2 sm:$0xff] %v900_v34  ;;  %v902_v12 = vmul.f32 %v886_v8, %v1406_v50  ;;  %v877_v11 = vrot.slane %v847_v6, 4  ;;  %v882_v42 = vrot.slane %v857_v49, 4  ;;  %v834_v29 = vmul.f32 %v1505_v44, %v815_v58 }
 0x27a   : > { %v835_v4 = vmul.f32 %v1509_v54, %v815_v58  ;;  %v843_v30 = vmul.f32 %v1195_v16, %v819_v40  ;;  %v856_v17 = vperm.slane %v840_v5, 0  ;;  %v904_v50 = vmul.f32 %v888_v31, %v1431_v24 }
 0x27b   : > { %924 = vst [vmem:[#allocation1 + $0x20] ss:$2 sm:$0xff] %v902_v12  ;;  %v885_v7 = vsel %vm543_vm1, %v846_v10, %v877_v11  ;;  %v854_v48 = vperm.slane %v838_v20, 0  ;;  %v881_v60 = vrot.slane %v855_v14, 4  ;;  %v850_v25 = vperm.slane %v834_v29, 0 }
 0x27c   : > { %v901_v52 = vmul.f32 %v885_v7, %v1419_v2  ;;  %v851_v18 = vperm.slane %v835_v4, 0  ;;  %v890_v21 = vsel %vm543_vm1, %v856_v17, %v882_v42  ;;  %v859_v39 = vperm.slane %v843_v30, 0 }
 0x27d   : > { %v842_v2 = vmul.f32 %v1520_v15, %v819_v40  ;;  %v906_v19 = vmul.f32 %v890_v21, %v1414_v61  ;;  %v889_v28 = vsel %vm543_vm1, %v854_v48, %v881_v60  ;;  %v1008_v30 = vand.u32 127, %v249_v0 }
 0x27e   : > { %920 = vst [vmem:[#allocation1 + $0x10] ss:$2 sm:$0xff] %v901_v52  ;;  %v879_v44 = vrot.slane %v851_v18, 4  ;;  %v883_v38 = vrot.slane %v859_v39, 4  ;;  %v905_v15 = vmul.f32 %v889_v28, %v1428_v22 }
 0x27f   : > { %v858_v43 = vperm.slane %v842_v2, 0 }
 0x280   : > { %v917_v53 = vld.sshfl [vmem:[#allocation1] sm:$0xff pattern:$0x75316420]  ;;  %v918_v54 = vld.sshfl [vmem:[#allocation1 + $0x8] sm:$0xff pattern:$0x75316420]  ;;  %v887_v27 = vsel %vm543_vm1, %v850_v25, %v879_v44 }
 0x281   : > { %v959_v9 = vsel %vm543_vm1, %v917_v53, 0.0  ;;  %v960_v16 = vsel %vm543_vm1, %v918_v54, 0.0  ;;  %931 = vst [vmem:[#allocation1] ss:$2 sm:$0xff] %v904_v50  ;;  %v903_v23 = vmul.f32 %v887_v27, %v1401_v46  ;;  %v891_v56 = vsel %vm543_vm1, %v858_v43, %v883_v38 }
 0x282   : > { %v961_v24 = vadd.f32 %v960_v16, %v959_v9  ;;  %v925_v32 = vld.sshfl [vmem:[#allocation1 + $0x20] sm:$0xff pattern:$0x75316420]  ;;  %v926_v33 = vld.sshfl [vmem:[#allocation1 + $0x28] sm:$0xff pattern:$0x75316420]  ;;  %v907_v63 = vmul.f32 %v891_v56, %v1441_v57 }
 0x283   : > { %v969_v35 = vsel %vm543_vm1, %v925_v32, 0.0  ;;  %v970_v36 = vsel %vm543_vm1, %v926_v33, 0.0  ;;  %937 = vst [vmem:[#allocation1 + $0x20] ss:$2 sm:$0xff] %v906_v19 }
 0x284   : > { %962 = vadd.xlane.f32.xlu0 %v961_v24  ;;  %v971_v41 = vadd.f32 %v970_v36, %v969_v35  ;;  %928 = vst [vmem:[#allocation1 + $0x30] ss:$2 sm:$0xff] %v903_v23 }
 0x285   : > { %v921_v45 = vld.sshfl [vmem:[#allocation1 + $0x10] sm:$0xff pattern:$0x75316420]  ;;  %v922_v61 = vld.sshfl [vmem:[#allocation1 + $0x18] sm:$0xff pattern:$0x75316420] }
 0x286   : > { %972 = vadd.xlane.f32.xlu1 %v971_v41  ;;  %v964_v26 = vsel %vm543_vm1, %v921_v45, 0.0  ;;  %v965_v46 = vsel %vm543_vm1, %v922_v61, 0.0  ;;  %934 = vst [vmem:[#allocation1 + $0x10] ss:$2 sm:$0xff] %v905_v15 }
 0x287   : > { %v966_v47 = vadd.f32 %v965_v46, %v964_v26 }
 0x288   : > { %v932_v55 = vld.sshfl [vmem:[#allocation1] sm:$0xff pattern:$0x75316420]  ;;  %v933_v13 = vld.sshfl [vmem:[#allocation1 + $0x8] sm:$0xff pattern:$0x75316420] }
 0x289   : > { %v979_v58 = vsel %vm543_vm1, %v932_v55, 0.0  ;;  %v980_v59 = vsel %vm543_vm1, %v933_v13, 0.0  ;;  %967 = vadd.xlane.f32.xlu2 %v966_v47 }
 0x28a   : > { %v981_v22 = vadd.f32 %v980_v59, %v979_v58  ;;  %v938_v20 = vld.sshfl [vmem:[#allocation1 + $0x20] sm:$0xff pattern:$0x75316420]  ;;  %v939_v57 = vld.sshfl [vmem:[#allocation1 + $0x28] sm:$0xff pattern:$0x75316420] }
 0x28b   : > { %v929_v49 = vld.sshfl [vmem:[#allocation1 + $0x30] sm:$0xff pattern:$0x75316420]  ;;  %v930_v62 = vld.sshfl [vmem:[#allocation1 + $0x38] sm:$0xff pattern:$0x75316420] }
 0x28c   : > { %982 = vadd.xlane.f32.xlu0 %v981_v22  ;;  %940 = vst [vmem:[#allocation1 + $0x30] ss:$2 sm:$0xff] %v907_v63  ;;  %v974_v34 = vsel %vm543_vm1, %v929_v49, 0.0  ;;  %v975_v37 = vsel %vm543_vm1, %v930_v62, 0.0  ;;  %v989_v40 = vsel %vm543_vm1, %v938_v20, 0.0  ;;  %v990_v31 = vsel %vm543_vm1, %v939_v57, 0.0 }
 0x28d   : > { %v935_v1 = vld.sshfl [vmem:[#allocation1 + $0x10] sm:$0xff pattern:$0x75316420]  ;;  %v936_v3 = vld.sshfl [vmem:[#allocation1 + $0x18] sm:$0xff pattern:$0x75316420]  ;;  %v976_v51 = vadd.f32 %v975_v37, %v974_v34  ;;  %v991_v29 = vadd.f32 %v990_v31, %v989_v40 }
 0x28e   : > { %v984_v5 = vsel %vm543_vm1, %v935_v1, 0.0  ;;  %v985_v6 = vsel %vm543_vm1, %v936_v3, 0.0 }
 0x28f   : > { %v986_v8 = vadd.f32 %v985_v6, %v984_v5 }
 0x291   : > { %977 = vadd.xlane.f32.xlu2 %v976_v51  ;;  %987 = vadd.xlane.f32.xlu1 %v986_v8 }
 0x293   : > { %v941_v10 = vld.sshfl [vmem:[#allocation1 + $0x30] sm:$0xff pattern:$0x75316420]  ;;  %v942_v12 = vld.sshfl [vmem:[#allocation1 + $0x38] sm:$0xff pattern:$0x75316420] }
 0x294   : > { %v994_v14 = vsel %vm543_vm1, %v941_v10, 0.0  ;;  %v995_v11 = vsel %vm543_vm1, %v942_v12, 0.0 }
 0x295   : > { %v996_v42 = vadd.f32 %v995_v11, %v994_v14 }
 0x297   : > { %997 = vadd.xlane.f32.xlu0 %v996_v42 }
 0x299   : > { %992 = vadd.xlane.f32.xlu2 %v991_v29 }
 0x2f7   : > { %v963_v4 = vpop.xlane.xlu0 %962 }
 0x2f8   : > { %v1009_v50 = vperm.slane %v963_v4, %v1008_v30 }
 0x2f9   : > { %v973_v17 = vpop.xlane.xlu1 %972 }
 0x2fa   : > { %v1011_v48 = vperm.slane %v973_v17, %v1008_v30 }
 0x2fc   : > { %v968_v7 = vpop.xlane.xlu2 %967 }
 0x2fd   : > { %v1010_v52 = vperm.slane %v968_v7, %v1008_v30 }
 0x2ff   : > { %v983_v18 = vpop.xlane.xlu0 %982  ;;  %v1017_v60 = vsel %vm672_vm2, %v1010_v52, %v1009_v50 }
 0x300   : > { %v1018_v39 = vsel %vm674_vm3, %v1011_v48, %v1017_v60  ;;  %v1013_v53 = vperm.slane %v983_v18, %v1008_v30 }
 0x304   : > { %v978_v21 = vpop.xlane.xlu2 %977  ;;  %v988_v54 = vpop.xlane.xlu1 %987 }
 0x305   : > { %v1012_v25 = vperm.slane %v978_v21, %v1008_v30  ;;  %v1014_v0 = vperm.slane %v988_v54, %v1008_v30 }
 0x307   : > { %v1019_v44 = vsel %vm676_vm4, %v1012_v25, %v1018_v39 }
 0x308   : > { %v1020_v9 = vsel %vm678_vm5, %v1013_v53, %v1019_v44 }
 0x309   : > { %v1021_v24 = vsel %vm680_vm6, %v1014_v0, %v1020_v9 }
 0x30a   : > { %v998_v16 = vpop.xlane.xlu0 %997 }
 0x30b   : > { %v1016_v19 = vperm.slane %v998_v16, %v1008_v30 }
 0x30c   : > { %v993_v2 = vpop.xlane.xlu2 %992 }
 0x30d   : > { %v1015_v27 = vperm.slane %v993_v2, %v1008_v30 }
 0x30f   : > { %v1022_v28 = vsel %vm682_vm7, %v1015_v27, %v1021_v24 }
 0x310   : > { %v1023_v23 = vsel %vm684_vm8, %v1016_v19, %v1022_v28 }
 0x311   : > { %1025 = vst.msk [vmem:[%s236_s13] sm:$0xff] %vm312_vm0, %v1023_v23 }
 0x312 PF: > { %p14_p7 = scmp.ge.s32.totalorder %s1314_s20, 4   ;;  %s1613_s15 = smov %s1254_s16 }
 0x313   : > { %s1614_s16 = smov %s1258_s17  ;;  %s1615_s17 = smov %s1324_s23 }
 0x314   : > { %s1616_s18 = smov %s1314_s20  ;;  %16 = sbr.rel (!%p14_p7) target bundleno = 3 (0x3), region = 85 }
 0x319   :  { %1045 = vsyncpa [#allocation3], 1 }
 0x31a   :  { %1047 = vsyncpa [#allocation3 + $0x1], 1 }

</bundles_post_ra>
